<compile_context>
chip_gen: v5e
topology: v5e:2x2
jax: 0.10.0
libtpu: 0.0.40
codegen_flags: <defaults>
</compile_context>

<pallas_src>
import functools

import jax
import jax.numpy as jnp
import numpy as np
from jax.experimental import pallas as pl
from jax.experimental.pallas import tpu as pltpu

_EPS = 1e-9
_PI = float(np.pi)
_PI_2 = float(np.pi / 2.0)
_PI_4 = float(np.pi / 4.0)
_TAN_PI_8 = 0.41421356237309503  # tan(pi/8)
_F32_MAX = 3.4028234e38
_SIGN_MASK = np.uint32(0x80000000)

_BLOCK_BUDGET_BYTES = 4 * 1024 * 1024   # ~4 MiB of input per grid step
_VMEM_LIMIT_BYTES = 48 * 1024 * 1024    # < v7x 64 MiB physical, fine on v5e/v6e


@functools.lru_cache(maxsize=1)
def _tensorcores_per_chip() -> int:
    """Best-effort: 2 TensorCores on v4 / v5p / v7x, else 1."""
    try:
        kind = (jax.devices()[0].device_kind or "").lower()
    except Exception:
        return 1
    if any(tag in kind for tag in ("v4", "v5p", "v7", "7x")):
        return 2
    return 1


def _atan2(y, x):
    """Elementwise float32 atan2 built from natively-lowering Mosaic ops.

    Range-reduced Cephes polynomial; reciprocal seeded on the EUP
    (pl.reciprocal approx) and refined with two Newton steps -> ~f32 accuracy.
    TODO(synk): IEEE signed-zero / +-inf edge cases deviate from torch.atan2
    (e.g. atan2(+-0., -0.) -> 0); fine for ordinary activations.
    """
    a = jnp.abs(y)
    b = jnp.abs(x)
    mx = jnp.maximum(a, b)
    mn = jnp.minimum(a, b)

    # One reciprocal total: t = mn/mx, and for t > tan(pi/8) use (mn-mx)/(mn+mx).
    use_reduce = mn > jnp.float32(_TAN_PI_8) * mx
    num = jnp.where(use_reduce, mn - mx, mn)
    den = jnp.where(use_reduce, mn + mx, mx)
    # Bias away from 0 (atan2(0,0) -> 0) and clamp away from inf so the Newton
    # refinement never sees 0*inf; min+add instead of the old cmp+select guard.
    den = jnp.minimum(den, jnp.float32(_F32_MAX)) + jnp.float32(1e-30)

    inv = pl.reciprocal(den, approx=True)            # EUP seed
    inv = inv * (jnp.float32(2.0) - den * inv)       # Newton step 1
    inv = inv * (jnp.float32(2.0) - den * inv)       # Newton step 2 -> ~1 ulp
    t = num * inv

    # arctan on |t| <= tan(pi/8): Cephes float32 minimax polynomial.
    z = t * t
    p = (((jnp.float32(8.05374449538e-2) * z - jnp.float32(1.38776856032e-1)) * z
          + jnp.float32(1.99777106478e-1)) * z - jnp.float32(3.33329491539e-1))
    r = jnp.where(use_reduce, jnp.float32(_PI_4), jnp.float32(0.0)) + (p * z * t + t)

    r = jnp.where(a > b, jnp.float32(_PI_2) - r, r)
    r = jnp.where(x < 0.0, jnp.float32(_PI) - r, r)
    # r >= 0 here; apply sign(y) with a sign-bit XOR (bitcasts are free,
    # and+xor replaces neg+cmp+select on the VALU).
    sign_y = pltpu.bitcast(y, jnp.uint32) & _SIGN_MASK
    r = pltpu.bitcast(pltpu.bitcast(r, jnp.uint32) ^ sign_y, jnp.float32)
    return r


def _euler_kernel(x_ref, mag_ref, phase_ref):
    # One contiguous full-row block per step; split re/im in-kernel. When
    # d_k/2 % 128 == 0 the slice is vreg-aligned (no lane relayout / VMEM copy).
    x = x_ref[...]
    half = x.shape[-1] // 2
    re = x[:, :half].astype(jnp.float32)
    im = x[:, half:].astype(jnp.float32)
    mag_ref[...] = jnp.sqrt(re * re + im * im + jnp.float32(_EPS)).astype(mag_ref.dtype)
    phase_ref[...] = _atan2(im, re).astype(phase_ref.dtype)


def _choose_tile_rows(n_rows: int, d_k: int, itemsize: int) -> int:
    """Tile rows from a per-step byte budget; device-aware grid shaping."""
    t = _BLOCK_BUDGET_BYTES // max(1, itemsize * d_k)
    t = max(8, (t // 8) * 8)
    if _tensorcores_per_chip() > 1 and n_rows >= 32:
        # 2 TensorCores: aim for >= 4 grid steps (>= 2 per core) so both cores
        # get work and each keeps its DMA pipeline primed.
        t = min(t, max(8, ((n_rows // 4) // 8) * 8))
    if t >= n_rows:
        return n_rows  # single block == whole array (exempt from (8,128) rule)
    return t


@functools.partial(jax.jit, static_argnames=("block_rows",))
def euler_transform(x, block_rows=None):
    """x: (..., d_k), d_k even. Returns (magnitude, phase), each (..., d_k/2)."""
    d_k = x.shape[-1]
    assert d_k % 2 == 0, "d_k must be even for Euler transform"
    half = d_k // 2

    lead_shape = x.shape[:-1]
    n_rows = int(np.prod(lead_shape)) if lead_shape else 1
    x2 = x.reshape(n_rows, d_k)

    if block_rows is not None:
        tile_rows = min(int(block_rows), n_rows)
    else:
        tile_rows = _choose_tile_rows(n_rows, d_k, x.dtype.itemsize)
    if tile_rows < n_rows:
        assert tile_rows % 8 == 0, "tile_rows must be a multiple of 8"

    # No padding / slicing: ragged last block is masked by Pallas (elementwise
    # op, so the undefined overhang is harmless and its stores are dropped).
    grid = (pl.cdiv(n_rows, tile_rows),)

    mag2, phase2 = pl.pallas_call(
        _euler_kernel,
        out_shape=(
            jax.ShapeDtypeStruct((n_rows, half), x.dtype),
            jax.ShapeDtypeStruct((n_rows, half), x.dtype),
        ),
        grid_spec=pltpu.PrefetchScalarGridSpec(
            num_scalar_prefetch=0,
            grid=grid,
            in_specs=[pl.BlockSpec((tile_rows, d_k), lambda i: (i, 0))],
            out_specs=[
                pl.BlockSpec((tile_rows, half), lambda i: (i, 0)),
                pl.BlockSpec((tile_rows, half), lambda i: (i, 0)),
            ],
        ),
        compiler_params=pltpu.CompilerParams(
            dimension_semantics=("parallel",),
            vmem_limit_bytes=_VMEM_LIMIT_BYTES,
        ),
    )(x2)

    return (mag2.reshape(*lead_shape, half), phase2.reshape(*lead_shape, half))


if __name__ == "__main__":
    key = jax.random.PRNGKey(0)

    def run_and_check(shape, block_rows=None):
        x = jax.random.normal(key, shape, dtype=jnp.float32)
        mag, phase = euler_transform(x, block_rows=block_rows)
        jax.block_until_ready((mag, phase))

        re, im = jnp.split(x, 2, axis=-1)
        mag_ref = jnp.sqrt(re ** 2 + im ** 2 + 1e-9)
        phase_ref = jnp.arctan2(im, re)

        assert mag.shape == re.shape and phase.shape == re.shape
        np.testing.assert_allclose(np.asarray(mag), np.asarray(mag_ref),
                                   rtol=1e-5, atol=1e-5)
        np.testing.assert_allclose(np.asarray(phase), np.asarray(phase_ref),
                                   rtol=1e-4, atol=1e-4)

    # Lane-aligned head dim -> vreg-aligned in-kernel split, lane-dense stores.
    run_and_check((2, 8, 256))
    # Small / lane-misaligned head dim, rows not a multiple of 8.
    run_and_check((3, 7, 32))
    # Multi-block grid with a ragged (masked) last block, no padding round trip.
    run_and_check((5, 37, 256), block_rows=8)

    print("KERNEL_OK")
</pallas_src>

<mosaic_0001>
module attributes {stable_mosaic.version = 11 : i64} {
  func.func @_euler_kernel(%arg0: i32, %arg1: memref<16x256xf32, #tpu.memory_space<vmem>>, %arg2: memref<16x128xf32, #tpu.memory_space<vmem>>, %arg3: memref<16x128xf32, #tpu.memory_space<vmem>>) attributes {dimension_semantics = [#tpu.dimension_semantics<parallel>], iteration_bounds = array<i64: 1>, scalar_prefetch = 0 : i64, scratch_operands = 0 : i64, tpu.core_type = #tpu.core_type<tc>, window_params = [{transform_indices = @transform_0, window_bounds = array<i64: 16, 256>}, {transform_indices = @transform_1, window_bounds = array<i64: 16, 128>}, {transform_indices = @transform_2, window_bounds = array<i64: 16, 128>}]} {
    %c0 = arith.constant 0 : index
    %c0_0 = arith.constant 0 : index
    %0 = vector.load %arg1[%c0, %c0_0] : memref<16x256xf32, #tpu.memory_space<vmem>>, vector<16x256xf32>
    %1 = vector.extract_strided_slice %0 {offsets = [0, 0], sizes = [16, 128], strides = [1, 1]} : vector<16x256xf32> to vector<16x128xf32>
    %2 = vector.extract_strided_slice %0 {offsets = [0, 128], sizes = [16, 128], strides = [1, 1]} : vector<16x256xf32> to vector<16x128xf32>
    %3 = arith.mulf %1, %1 : vector<16x128xf32>
    %4 = arith.mulf %2, %2 : vector<16x128xf32>
    %5 = arith.addf %3, %4 : vector<16x128xf32>
    %cst = arith.constant 9.99999971E-10 : f32
    %6 = vector.broadcast %cst : f32 to vector<16x128xf32>
    %7 = arith.addf %5, %6 : vector<16x128xf32>
    %8 = math.sqrt %7 : vector<16x128xf32>
    %c0_1 = arith.constant 0 : index
    %c0_2 = arith.constant 0 : index
    %9 = vector.load %arg2[%c0_1, %c0_2] : memref<16x128xf32, #tpu.memory_space<vmem>>, vector<16x128xf32>
    tpu.vector_store %arg2[%c0_1, %c0_2], %8 {strides = array<i32>} : memref<16x128xf32, #tpu.memory_space<vmem>>, vector<16x128xf32>,
    %10 = math.absf %2 : vector<16x128xf32>
    %11 = math.absf %1 : vector<16x128xf32>
    %12 = arith.maximumf %10, %11 : vector<16x128xf32>
    %13 = arith.minimumf %10, %11 : vector<16x128xf32>
    %cst_3 = arith.constant 0.414213568 : f32
    %14 = vector.broadcast %cst_3 : f32 to vector<16x128xf32>
    %15 = arith.mulf %14, %12 : vector<16x128xf32>
    %16 = arith.cmpf ogt, %13, %15 : vector<16x128xf32>
    %17 = arith.subf %13, %12 : vector<16x128xf32>
    %18 = arith.select %16, %17, %13 : vector<16x128xi1>, vector<16x128xf32>
    %19 = arith.addf %13, %12 : vector<16x128xf32>
    %20 = arith.select %16, %19, %12 : vector<16x128xi1>, vector<16x128xf32>
    %cst_4 = arith.constant 3.40282347E+38 : f32
    %21 = vector.broadcast %cst_4 : f32 to vector<16x128xf32>
    %22 = arith.minimumf %20, %21 : vector<16x128xf32>
    %cst_5 = arith.constant 1.000000e-30 : f32
    %23 = vector.broadcast %cst_5 : f32 to vector<16x128xf32>
    %24 = arith.addf %22, %23 : vector<16x128xf32>
    %25 = tpu.reciprocal %24 {approx = true} : vector<16x128xf32> -> vector<16x128xf32>
    %26 = arith.mulf %24, %25 : vector<16x128xf32>
    %cst_6 = arith.constant 2.000000e+00 : f32
    %27 = vector.broadcast %cst_6 : f32 to vector<16x128xf32>
    %28 = arith.subf %27, %26 : vector<16x128xf32>
    %29 = arith.mulf %25, %28 : vector<16x128xf32>
    %30 = arith.mulf %24, %29 : vector<16x128xf32>
    %cst_7 = arith.constant 2.000000e+00 : f32
    %31 = vector.broadcast %cst_7 : f32 to vector<16x128xf32>
    %32 = arith.subf %31, %30 : vector<16x128xf32>
    %33 = arith.mulf %29, %32 : vector<16x128xf32>
    %34 = arith.mulf %18, %33 : vector<16x128xf32>
    %35 = arith.mulf %34, %34 : vector<16x128xf32>
    %cst_8 = arith.constant 0.0805374458 : f32
    %36 = vector.broadcast %cst_8 : f32 to vector<16x128xf32>
    %37 = arith.mulf %36, %35 : vector<16x128xf32>
    %cst_9 = arith.constant 0.138776854 : f32
    %38 = vector.broadcast %cst_9 : f32 to vector<16x128xf32>
    %39 = arith.subf %37, %38 : vector<16x128xf32>
    %40 = arith.mulf %39, %35 : vector<16x128xf32>
    %cst_10 = arith.constant 0.199777111 : f32
    %41 = vector.broadcast %cst_10 : f32 to vector<16x128xf32>
    %42 = arith.addf %40, %41 : vector<16x128xf32>
    %43 = arith.mulf %42, %35 : vector<16x128xf32>
    %cst_11 = arith.constant 0.333329499 : f32
    %44 = vector.broadcast %cst_11 : f32 to vector<16x128xf32>
    %45 = arith.subf %43, %44 : vector<16x128xf32>
    %cst_12 = arith.constant 0.785398185 : f32
    %cst_13 = arith.constant 0.000000e+00 : f32
    %46 = vector.broadcast %cst_12 : f32 to vector<16x128xf32>
    %47 = vector.broadcast %cst_13 : f32 to vector<16x128xf32>
    %48 = arith.select %16, %46, %47 : vector<16x128xi1>, vector<16x128xf32>
    %49 = arith.mulf %45, %35 : vector<16x128xf32>
    %50 = arith.mulf %49, %34 : vector<16x128xf32>
    %51 = arith.addf %50, %34 : vector<16x128xf32>
    %52 = arith.addf %48, %51 : vector<16x128xf32>
    %53 = arith.cmpf ogt, %10, %11 : vector<16x128xf32>
    %cst_14 = arith.constant 1.57079637 : f32
    %54 = vector.broadcast %cst_14 : f32 to vector<16x128xf32>
    %55 = arith.subf %54, %52 : vector<16x128xf32>
    %56 = arith.select %53, %55, %52 : vector<16x128xi1>, vector<16x128xf32>
    %cst_15 = arith.constant 0.000000e+00 : f32
    %57 = vector.broadcast %cst_15 : f32 to vector<16x128xf32>
    %58 = arith.cmpf olt, %1, %57 : vector<16x128xf32>
    %cst_16 = arith.constant 3.14159274 : f32
    %59 = vector.broadcast %cst_16 : f32 to vector<16x128xf32>
    %60 = arith.subf %59, %56 : vector<16x128xf32>
    %61 = arith.select %58, %60, %56 : vector<16x128xi1>, vector<16x128xf32>
    %62 = tpu.bitcast %2 : vector<16x128xf32> -> vector<16x128xi32>
    %c-2147483648_i32 = arith.constant -2147483648 : i32
    %63 = vector.broadcast %c-2147483648_i32 : i32 to vector<16x128xi32>
    %64 = arith.andi %62, %63 : vector<16x128xi32>
    %65 = tpu.bitcast %61 : vector<16x128xf32> -> vector<16x128xi32>
    %66 = arith.xori %65, %64 : vector<16x128xi32>
    %67 = tpu.bitcast %66 : vector<16x128xi32> -> vector<16x128xf32>
    %c0_17 = arith.constant 0 : index
    %c0_18 = arith.constant 0 : index
    %68 = vector.load %arg3[%c0_17, %c0_18] : memref<16x128xf32, #tpu.memory_space<vmem>>, vector<16x128xf32>
    tpu.vector_store %arg3[%c0_17, %c0_18], %67 {strides = array<i32>} : memref<16x128xf32, #tpu.memory_space<vmem>>, vector<16x128xf32>,
    return
  }
  func.func @transform_0(%arg0: i32) -> (i32, i32) {
    %c0_i32 = arith.constant 0 : i32
    %c0_i32_0 = arith.constant 0 : i32
    return %arg0, %c0_i32 : i32, i32
  }
  func.func @transform_1(%arg0: i32) -> (i32, i32) {
    %c0_i32 = arith.constant 0 : i32
    %c0_i32_0 = arith.constant 0 : i32
    return %arg0, %c0_i32 : i32, i32
  }
  func.func @transform_2(%arg0: i32) -> (i32, i32) {
    %c0_i32 = arith.constant 0 : i32
    %c0_i32_0 = arith.constant 0 : i32
    return %arg0, %c0_i32 : i32, i32
  }
}

</mosaic_0001>

<bundles_post_ra>
// kernel: euler_transform.1
= control target key start
LH: loop header
LB: loop body
LE: loop exit
PB: predicated region body
PF: predicated region fallthrough
CT: control target
= control target key end

     0   :  { %8 = vsyncpa [#allocation3], 0  ;;  %s425_s0 = inlined_call_operand.hbm [shape: f32[16,256], index: 0, kind: input, shape index: {}]   ;;  %s426_s1 = inlined_call_operand.hbm [shape: f32[16,128], index: 1, kind: output, shape index: {0}]   ;;  %s427_s2 = inlined_call_operand.hbm [shape: f32[16,128], index: 2, kind: output, shape index: {1}]  }
   0x1   :  { %9 = vsyncpa [#allocation4], 0 }
   0x2   :  { %10 = vsyncpa [#allocation7], 0  ;;  %s15_s11 = sshll.u32 %s425_s0, 4  ;;  %s289_s12 = smov [#allocation2]   ;;  %s16_s11 = int_to_ptr.hbm [resolvable:$true] %s15_s11 }
   0x3   :  { %s17_s13 = sshll.u32 %s289_s12, 4  ;;  %s290_s14 = smov 256   ;;  %s18_s13 = int_to_ptr.vmem [resolvable:$true] %s17_s13 }
   0x4   :  { %s291_s15 = smov 16  }
   0x5   :  { %23 = dma.hbm_to_vmem [thread:$0]  %s16_s11, 512, %s18_s13, [#allocation3], %s290_s14, %s290_s14, %s291_s15  }
   0x6   :  { %283 = dma.done.wait [#allocation3], 512  }
   0x7   :  { %284 = vsyncadd [#allocation3], 4294966784  ;;  %v315_v0 = vld [vmem:[#allocation2] sm:$0xff]  ;;  %v317_v1 = vld [vmem:[#allocation2 + $0x8] sm:$0xff]  ;;  %s292_s0 = smov [#allocation5]   ;;  %s160_s19 = sshll.u32 %s426_s1, 4  ;;  %s161_s19 = int_to_ptr.hbm [resolvable:$true] %s160_s19 }
   0x8   :  { %v319_v2 = vld [vmem:[#allocation2 + $0x10] sm:$0xff]  ;;  %v32_v3 = vmul.f32 %v315_v0, %v315_v0  ;;  %v34_v4 = vmul.f32 %v317_v1, %v317_v1  ;;  %v325_v5 = vld [vmem:[#allocation2 + $0x18] sm:$0xff]  ;;  %v330_v7 = vand.u32 2147483647, %v317_v1  ;;  %v335_v9 = vand.u32 2147483647, %v315_v0 }
   0x9   :  { %v33_v6 = vmul.f32 %v319_v2, %v319_v2  ;;  %v35_v8 = vmul.f32 %v325_v5, %v325_v5  ;;  %v338_v10 = vand.u32 2147483647, %v325_v5  ;;  %v341_v11 = vand.u32 2147483647, %v319_v2  ;;  %s381_s16 = sshll.u32 %s292_s0, 4  ;;  %s293_s1 = smov 128   ;;  %s159_s16 = int_to_ptr.vmem [resolvable:$true] %s381_s16 }
   0xa   :  { %v36_v12 = vadd.f32 %v34_v4, %v32_v3  ;;  %v345_v14 = vmax.f32 %v330_v7, %v335_v9  ;;  %v349_v15 = vmin.f32 %v330_v7, %v335_v9  ;;  %s294_s20 = smov 8   ;;  %vm130_vm6 = vcmp.gt.f32.partialorder %v330_v7, %v335_v9  ;;  %s296_s21 = smov [#allocation6]  }
   0xb   :  { %v37_v13 = vadd.f32 %v35_v8, %v33_v6  ;;  %v353_v17 = vmax.f32 %v338_v10, %v341_v11  ;;  %v357_v18 = vmin.f32 %v338_v10, %v341_v11  ;;  %vm131_vm7 = vcmp.gt.f32.partialorder %v338_v10, %v341_v11  ;;  %s171_s22 = sshll.u32 %s296_s21, 4  ;;  %s173_s25 = sshll.u32 %s427_s2, 4  ;;  %s172_s22 = int_to_ptr.vmem [resolvable:$true] %s171_s22  ;;  %s174_s25 = int_to_ptr.hbm [resolvable:$true] %s173_s25 }
   0xc   :  { %v38_v16 = vadd.f32 1e-09, %v36_v12  ;;  %v360_v20 = vmul.f32 0.41421357, %v345_v14  ;;  %v82_v21 = vadd.f32 %v349_v15, %v345_v14  ;;  %v78_v56 = vsub.f32 %v349_v15, %v345_v14 }
   0xd   :  { %v39_v19 = vadd.f32 1e-09, %v37_v13  ;;  %v367_v22 = vmul.f32 0.41421357, %v353_v17  ;;  %v83_v23 = vadd.f32 %v357_v18, %v353_v17  ;;  %v79_v60 = vsub.f32 %v357_v18, %v353_v17 }
   0xe   :  { %203 = vrsqrt.f32 %v38_v16  ;;  %vm76_vm0 = vcmp.gt.f32.partialorder %v349_v15, %v360_v20  ;;  %vm47_vm2 = vcmp.eq.f32.partialorder %v38_v16, inf  ;;  %vm49_vm3 = vcmp.eq.f32.partialorder %v38_v16, 0.0 }
   0xf   :  { %205 = vrsqrt.f32 %v39_v19  ;;  %v84_v24 = vsel %vm76_vm0, %v82_v21, %v345_v14  ;;  %vm77_vm1 = vcmp.gt.f32.partialorder %v357_v18, %v367_v22  ;;  %v50_v44 = vand.u32 2147483648, %v38_v16 }
  0x10   :  { %v86_v25 = vmin.f32 %v84_v24, 3.4028235e+38  ;;  %v85_v26 = vsel %vm77_vm1, %v83_v23, %v353_v17  ;;  %vm59_vm4 = vcmp.eq.f32.partialorder %v39_v19, inf  ;;  %v62_v47 = vand.u32 2147483648, %v39_v19 }
  0x11   :  { %v87_v29 = vmin.f32 %v85_v26, 3.4028235e+38  ;;  %vm61_vm5 = vcmp.eq.f32.partialorder %v39_v19, 0.0  ;;  %v80_v63 = vsel %vm76_vm0, %v78_v56, %v349_v15  ;;  %v81_v6 = vsel %vm77_vm1, %v79_v60, %v357_v18 }
  0x12   :  { %v88_v28 = vadd.f32 1e-30, %v86_v25  ;;  %vm136_vm8 = vcmp.lt.f32.partialorder %v315_v0, 0.0  ;;  %v144_v15 = vand.u32 2147483648, %v317_v1  ;;  %vm137_vm9 = vcmp.lt.f32.partialorder %v319_v2, 0.0 }
  0x13   :  { %v89_v33 = vadd.f32 1e-30, %v87_v29  ;;  %v145_v18 = vand.u32 2147483648, %v325_v5 }
  0x14   :  { %v204_v27 = vpop.eup %203  ;;  %207 = vrcp.f32 %v88_v28 }
  0x15   :  { %v206_v30 = vpop.eup %205  ;;  %v41_v31 = vmul.f32 %v204_v27, %v38_v16  ;;  %209 = vrcp.f32 %v89_v33 }
  0x16   :  { %v53_v32 = vmul.f32 %v206_v30, %v39_v19 }
  0x17   :  { %v42_v34 = vmul.f32 %v204_v27, %v41_v31 }
  0x18   :  { %v54_v35 = vmul.f32 %v206_v30, %v53_v32 }
  0x19   :  { %v43_v36 = vmul.f32 0.5, %v42_v34 }
  0x1a   :  { %v55_v37 = vmul.f32 0.5, %v54_v35  ;;  %v208_v39 = vpop.eup %207  ;;  %v295_v35 = vmov 0.0  }
  0x1b   :  { %v44_v38 = vsub.f32 1.5, %v43_v36  ;;  %v92_v42 = vmul.f32 %v208_v39, %v88_v28  ;;  %v210_v43 = vpop.eup %209  ;;  %v120_v36 = vsel %vm76_vm0, 0.7853982, %v295_v35 }
  0x1c   :  { %v56_v40 = vsub.f32 1.5, %v55_v37  ;;  %v93_v49 = vmul.f32 %v210_v43, %v89_v33 }
  0x1d   :  { %v45_v41 = vmul.f32 %v204_v27, %v44_v38  ;;  %v94_v48 = vsub.f32 2.0, %v92_v42 }
  0x1e   :  { %v57_v45 = vmul.f32 %v206_v30, %v56_v40  ;;  %v95_v53 = vsub.f32 2.0, %v93_v49 }
  0x1f   :  { %v46_v46 = vmul.f32 %v45_v41, %v38_v16  ;;  %v96_v52 = vmul.f32 %v208_v39, %v94_v48  ;;  %v121_v39 = vsel %vm77_vm1, 0.7853982, %v295_v35 }
  0x20   :  { %v58_v50 = vmul.f32 %v57_v45, %v39_v19  ;;  %v97_v59 = vmul.f32 %v210_v43, %v95_v53 }
  0x21   :  { %v48_v51 = vsel %vm47_vm2, %v38_v16, %v46_v46  ;;  %v98_v58 = vmul.f32 %v96_v52, %v88_v28 }
  0x22   :  { %v51_v54 = vsel %vm49_vm3, %v50_v44, %v48_v51  ;;  %v60_v55 = vsel %vm59_vm4, %v39_v19, %v58_v50  ;;  %v99_v62 = vmul.f32 %v97_v59, %v89_v33 }
  0x23   :  { %64 = vst [vmem:[#allocation5] sm:$0xff] %v51_v54  ;;  %v63_v57 = vsel %vm61_vm5, %v62_v47, %v60_v55  ;;  %v100_v61 = vsub.f32 2.0, %v98_v58 }
  0x24   :  { %65 = vst [vmem:[#allocation5 + $0x8] sm:$0xff] %v63_v57  ;;  %v101_v4 = vsub.f32 2.0, %v99_v62 }
  0x25   :  { %166 = dma.vmem_to_hbm [thread:$0]  %s159_s16, 256, %s161_s19, [#allocation4], %s293_s1, %s293_s1, %s294_s20   ;;  %v102_v3 = vmul.f32 %v100_v61, %v96_v52 }
  0x26   :  { %v103_v12 = vmul.f32 %v101_v4, %v97_v59 }
  0x27   :  { %v104_v8 = vmul.f32 %v102_v3, %v80_v63 }
  0x28   :  { %v105_v14 = vmul.f32 %v103_v12, %v81_v6 }
  0x29   :  { %v106_v13 = vmul.f32 %v104_v8, %v104_v8 }
  0x2a   :  { %v107_v17 = vmul.f32 %v105_v14, %v105_v14 }
  0x2b   :  { %v108_v16 = vmul.f32 0.080537446, %v106_v13 }
  0x2c   :  { %v109_v21 = vmul.f32 0.080537446, %v107_v17 }
  0x2d   :  { %v191_v19 = vadd.f32 -0.13877685, %v108_v16 }
  0x2e   :  { %v192_v24 = vadd.f32 -0.13877685, %v109_v21 }
  0x2f   :  { %v112_v23 = vmul.f32 %v191_v19, %v106_v13 }
  0x30   :  { %v113_v26 = vmul.f32 %v192_v24, %v107_v17 }
  0x31   :  { %v114_v25 = vadd.f32 0.19977711, %v112_v23 }
  0x32   :  { %v115_v28 = vadd.f32 0.19977711, %v113_v26 }
  0x33   :  { %v116_v27 = vmul.f32 %v114_v25, %v106_v13 }
  0x34   :  { %v117_v30 = vmul.f32 %v115_v28, %v107_v17 }
  0x35   :  { %v193_v29 = vadd.f32 -0.3333295, %v116_v27 }
  0x36   :  { %v194_v32 = vadd.f32 -0.3333295, %v117_v30 }
  0x37   :  { %v122_v31 = vmul.f32 %v193_v29, %v106_v13 }
  0x38   :  { %v123_v34 = vmul.f32 %v194_v32, %v107_v17 }
  0x39   :  { %v124_v33 = vmul.f32 %v122_v31, %v104_v8 }
  0x3a   :  { %v125_v38 = vmul.f32 %v123_v34, %v105_v14 }
  0x3b   :  { %v126_v37 = vadd.f32 %v124_v33, %v104_v8 }
  0x3c   :  { %v127_v41 = vadd.f32 %v125_v38, %v105_v14 }
  0x3d   :  { %v128_v40 = vadd.f32 %v126_v37, %v120_v36 }
  0x3e   :  { %v129_v43 = vadd.f32 %v127_v41, %v121_v39 }
  0x3f   :  { %v132_v42 = vsub.f32 1.5707964, %v128_v40 }
  0x40   :  { %v133_v20 = vsub.f32 1.5707964, %v129_v43 }
  0x41   :  { %v134_v44 = vsel %vm130_vm6, %v132_v42, %v128_v40 }
  0x42   :  { %v138_v45 = vsub.f32 3.1415927, %v134_v44  ;;  %v135_v46 = vsel %vm131_vm7, %v133_v20, %v129_v43 }
  0x43   :  { %v139_v47 = vsub.f32 3.1415927, %v135_v46 }
  0x44   :  { %v140_v22 = vsel %vm136_vm8, %v138_v45, %v134_v44 }
  0x45   :  { %v148_v7 = vxor.u32 %v144_v15, %v140_v22  ;;  %v141_v9 = vsel %vm137_vm9, %v139_v47, %v135_v46 }
  0x46   :  { %v149_v0 = vxor.u32 %v145_v18, %v141_v9 }
  0x47   :  { %152 = vst [vmem:[#allocation6] sm:$0xff] %v148_v7 }
  0x48   :  { %153 = vst [vmem:[#allocation6 + $0x8] sm:$0xff] %v149_v0 }
  0x49   :  { %179 = dma.vmem_to_hbm [thread:$0]  %s172_s22, 256, %s174_s25, [#allocation7], %s293_s1, %s293_s1, %s294_s20  }
  0x4a   :  { %285 = dma.done.wait [#allocation4], 256  }
  0x4b   :  { %286 = vsyncadd [#allocation4], 4294967040 }
  0x4c   :  { %287 = dma.done.wait [#allocation7], 256  }
  0x4d   :  { %288 = vsyncadd [#allocation7], 4294967040 }
  0x4e   :  { %188 = vsyncpa [#allocation3], 1 }
  0x4f   :  { %189 = vsyncpa [#allocation4], 1 }
  0x50   :  { %190 = vsyncpa [#allocation7], 1 }

</bundles_post_ra>
